<compile_context>
chip_gen: v5e
topology: v5e:2x2
jax: 0.10.0
libtpu: 0.0.40
codegen_flags: <defaults>
</compile_context>

<pallas_src>
import jax
import jax.numpy as jnp
from jax.experimental import pallas as pl
from jax.experimental.pallas import tpu as pltpu


def linear_kernel(wt_ref, b_ref, x_ref, o_ref):
    # wt_ref: (IN, OUT)  resident across all grid steps (weight.T)
    # b_ref:  (1, OUT)   resident across all grid steps
    # x_ref:  (TB, IN)   one batch tile, batch-major (batch on sublanes)
    # o_ref:  (TB, OUT)  batch-major output tile
    y = jnp.dot(x_ref[...], wt_ref[...], preferred_element_type=jnp.float32)
    o_ref[...] = (y + b_ref[...]).astype(o_ref.dtype)


def _round_up(x, m):
    return ((x + m - 1) // m) * m


# Largest batch tile: double-buffered x+y footprint ~= 2048 * TB_MAX bytes
# (each (TB, 3) / (TB, 4) f32 block pads its last dim to one 128-lane tile),
# i.e. ~33 MiB at 16384 — inside the 48 MiB scoped budget below.
_TB_MAX = 16384
_VMEM_LIMIT_BYTES = 48 * 1024 * 1024


def linear_forward(x, weight, bias, *, tb=None):
    """Pallas nn.Linear forward: x @ weight.T + bias, batch-major throughout.

    x:      (B, IN)
    weight: (OUT, IN)   (PyTorch layout)
    bias:   (OUT,)
    returns (B, OUT)
    """
    B, IN = x.shape
    OUT, IN_w = weight.shape
    assert IN == IN_w

    if tb is None:
        if B <= 1024:
            # Single step; block == full array dims is always legal regardless
            # of (8, 128) alignment.
            tb = B
        else:
            # Aim for >= 4 grid steps (>= 2 engages both v7x TensorCores via
            # the "parallel" batch axis) while keeping each step's useful HBM
            # traffic (~28 B/row) above the per-step overhead break-even and
            # the VMEM footprint under budget.  Multiple of 128 keeps the
            # sublane dim aligned and DMA granules large.
            tb = max(128, min(_TB_MAX, _round_up(pl.cdiv(B, 4), 128)))

    wt = weight.T                    # (IN, OUT): 48-byte transpose, O(1) not O(B)
    bias_row = bias.reshape(1, OUT)  # broadcast along sublanes inside the kernel

    vmem = pltpu.MemorySpace.VMEM

    return pl.pallas_call(
        linear_kernel,
        out_shape=jax.ShapeDtypeStruct((B, OUT), x.dtype),
        grid=(pl.cdiv(B, tb),),
        in_specs=[
            # Weight and bias: same block every step -> stay resident in VMEM.
            pl.BlockSpec((IN, OUT), lambda i: (0, 0), memory_space=vmem),
            pl.BlockSpec((1, OUT), lambda i: (0, 0), memory_space=vmem),
            # x streams by batch tile along the sublane (row) axis.
            pl.BlockSpec((tb, IN), lambda i: (i, 0), memory_space=vmem),
        ],
        out_specs=pl.BlockSpec((tb, OUT), lambda i: (i, 0), memory_space=vmem),
        compiler_params=pltpu.CompilerParams(
            dimension_semantics=("parallel",),
            vmem_limit_bytes=_VMEM_LIMIT_BYTES,
        ),
    )(wt, bias_row, x)


if __name__ == "__main__":
    key = jax.random.PRNGKey(0)
    k_x, k_w, k_b, k_x2 = jax.random.split(key, 4)

    in_features = 3
    out_features = 4

    # Deterministic parameter init mimicking PyTorch nn.Linear default:
    # uniform(-1/sqrt(in_features), 1/sqrt(in_features)).
    bound = 1.0 / jnp.sqrt(jnp.float32(in_features))
    weight = jax.random.uniform(
        k_w, (out_features, in_features), jnp.float32, -bound, bound
    )
    bias = jax.random.uniform(
        k_b, (out_features,), jnp.float32, -bound, bound
    )

    # Small-batch check (matches the module's typical usage).
    batch = 8
    x = jax.random.normal(k_x, (batch, in_features), jnp.float32)
    out = jax.block_until_ready(linear_forward(x, weight, bias))
    ref = x @ weight.T + bias
    assert out.shape == (batch, out_features)
    assert jnp.allclose(out, ref, atol=1e-5, rtol=1e-5)

    # Non-aligned multi-step check: exercises batch tiling, the partial final
    # block's masked writeback, and the multi-step "parallel" grid.
    batch2 = 4500
    x2 = jax.random.normal(k_x2, (batch2, in_features), jnp.float32)
    out2 = jax.block_until_ready(linear_forward(x2, weight, bias))
    ref2 = x2 @ weight.T + bias
    assert out2.shape == (batch2, out_features)
    assert jnp.allclose(out2, ref2, atol=1e-5, rtol=1e-5)

    print("KERNEL_OK")
</pallas_src>

<mosaic_0001>
module attributes {stable_mosaic.version = 11 : i64} {
  func.func @linear_kernel(%arg0: i32, %arg1: memref<3x4xf32, #tpu.memory_space<vmem>>, %arg2: memref<1x4xf32, #tpu.memory_space<vmem>>, %arg3: memref<8x3xf32, #tpu.memory_space<vmem>>, %arg4: memref<8x4xf32, #tpu.memory_space<vmem>>) attributes {dimension_semantics = [#tpu.dimension_semantics<parallel>], iteration_bounds = array<i64: 1>, scalar_prefetch = 0 : i64, scratch_operands = 0 : i64, tpu.core_type = #tpu.core_type<tc>, window_params = [{pipeline_mode = #tpu.pipeline_mode<synchronous>, transform_indices = @transform_0, window_bounds = array<i64: 3, 4>}, {pipeline_mode = #tpu.pipeline_mode<synchronous>, transform_indices = @transform_1, window_bounds = array<i64: 1, 4>}, {transform_indices = @transform_2, window_bounds = array<i64: 8, 3>}, {transform_indices = @transform_3, window_bounds = array<i64: 8, 4>}]} {
    %c0 = arith.constant 0 : index
    %c0_0 = arith.constant 0 : index
    %0 = vector.load %arg3[%c0, %c0_0] : memref<8x3xf32, #tpu.memory_space<vmem>>, vector<8x3xf32>
    %c0_1 = arith.constant 0 : index
    %c0_2 = arith.constant 0 : index
    %1 = vector.load %arg1[%c0_1, %c0_2] : memref<3x4xf32, #tpu.memory_space<vmem>>, vector<3x4xf32>
    %cst = arith.constant dense<0.000000e+00> : vector<8x4xf32>
    %2 = tpu.matmul %0, %1, %cst {dimension_numbers = #tpu.dot_dimension_numbers<[1], [0], [0], [1], [0, 0, 1, 1], [], []>} : vector<8x3xf32>, vector<3x4xf32>, vector<8x4xf32> -> vector<8x4xf32>
    %c0_3 = arith.constant 0 : index
    %c0_4 = arith.constant 0 : index
    %3 = vector.load %arg2[%c0_3, %c0_4] : memref<1x4xf32, #tpu.memory_space<vmem>>, vector<1x4xf32>
    %4 = vector.broadcast %3 : vector<1x4xf32> to vector<8x4xf32>
    %5 = arith.addf %2, %4 : vector<8x4xf32>
    %c0_5 = arith.constant 0 : index
    %c0_6 = arith.constant 0 : index
    %6 = vector.load %arg4[%c0_5, %c0_6] : memref<8x4xf32, #tpu.memory_space<vmem>>, vector<8x4xf32>
    tpu.vector_store %arg4[%c0_5, %c0_6], %5 {strides = array<i32>} : memref<8x4xf32, #tpu.memory_space<vmem>>, vector<8x4xf32>,
    return
  }
  func.func @transform_0(%arg0: i32) -> (i32, i32) {
    %c0_i32 = arith.constant 0 : i32
    %c0_i32_0 = arith.constant 0 : i32
    %c0_i32_1 = arith.constant 0 : i32
    return %c0_i32, %c0_i32_0 : i32, i32
  }
  func.func @transform_1(%arg0: i32) -> (i32, i32) {
    %c0_i32 = arith.constant 0 : i32
    %c0_i32_0 = arith.constant 0 : i32
    %c0_i32_1 = arith.constant 0 : i32
    return %c0_i32, %c0_i32_0 : i32, i32
  }
  func.func @transform_2(%arg0: i32) -> (i32, i32) {
    %c0_i32 = arith.constant 0 : i32
    %c0_i32_0 = arith.constant 0 : i32
    return %arg0, %c0_i32 : i32, i32
  }
  func.func @transform_3(%arg0: i32) -> (i32, i32) {
    %c0_i32 = arith.constant 0 : i32
    %c0_i32_0 = arith.constant 0 : i32
    return %arg0, %c0_i32 : i32, i32
  }
}

</mosaic_0001>

<bundles_post_ra>
// kernel: tpu_custom_call.1
= control target key start
LH: loop header
LB: loop body
LE: loop exit
PB: predicated region body
PF: predicated region fallthrough
CT: control target
= control target key end

     0   :  { %vm24_vm0 = vcmask 1042432   ;;  %vm20_vm1 = vcmask 23552   ;;  %vm48_vm2 = vcmask 31744   ;;  %s89_s0 = inlined_call_operand.vmem [shape: f32[3,4], index: 0, kind: input, shape index: {}]   ;;  %s90_s2 = inlined_call_operand.vmem [shape: f32[8,3], index: 2, kind: input, shape index: {}]   ;;  %s91_s1 = inlined_call_operand.vmem [shape: f32[1,4], index: 1, kind: input, shape index: {}]   ;;  %s92_s3 = inlined_call_operand.vmem [shape: f32[8,4], index: 3, kind: output, shape index: {}]  }
   0x1   :  { %v15_v0 = vld [vmem:[%s89_s0] sm:$0x7] }
   0x2   :  { %v14_v1 = vld [vmem:[%s90_s2] sm:$0xff]  ;;  %54 = vmatpush.msk.msra.mxu0 %vm24_vm0, %v15_v0 }
   0x3   :  { %55 = vmatmul.msk.f32.vlgmr.msra.gmra.mxu0 %vm20_vm1, %v14_v1  ;;  %v56_v2 = vld [vmem:[%s91_s1] ss:$0 sm:$0xff] }
  0x80   :  { %v45_v3 = vpop.f32.mrf.mxu0 }
  0x81   :  { %v46_v4 = vadd.f32 %v56_v2, %v45_v3 }
  0x83   :  { %49 = vst.msk [vmem:[%s92_s3] sm:$0xff] %vm48_vm2, %v46_v4 }

</bundles_post_ra>
